<compile_context>
chip_gen: v7x
topology: tpu7x:2x2x1
jax: 0.10.0
libtpu: 0.0.40
codegen_flags: <defaults>
</compile_context>

<pallas_src>
import math

import jax
import jax.numpy as jnp
from jax.experimental import pallas as pl
from jax.experimental.pallas import tpu as pltpu


def _make_kernel(block_batch, patches, pb_per_patch):
    def kernel(x_ref, w_ref, pb_ref, o_ref):
        # x_ref : (Mt, K)           Mt = block_batch * patches rows of X
        # w_ref : (K, tn)           pre-transposed Linear weight
        # pb_ref: (patches, tn)     pos_emb + bias   (or (Mt, tn) fallback)
        # o_ref : (Mt, tn)
        y = jnp.dot(x_ref[...], w_ref[...],
                    preferred_element_type=jnp.float32)          # MXU, f32 acc
        if pb_per_patch:
            mt, n = y.shape
            # Layout-preserving split of the row dim (patches % 8 == 0), then a
            # single VPU broadcast-add of the un-replicated pos+bias table.
            y = (y.reshape(block_batch, patches, n) + pb_ref[...][None]
                 ).reshape(mt, n)
        else:
            y = y + pb_ref[...]
        o_ref[...] = y.astype(o_ref.dtype)
    return kernel


def _sublane_step(patches):
    # Smallest block_batch granularity for which Mt = bb*patches is a multiple of 8.
    return 8 // math.gcd(patches, 8)


def _align_block_batch(bb, batch, patches):
    if bb >= batch:
        return batch
    step = _sublane_step(patches)
    bb = max(step, (bb // step) * step)
    return min(bb, batch)


def _select_tiles(batch, patches, dim_inter, vfs_pad, *, target_rows=1024,
                  max_tn=2048, tile_budget_bytes=36 << 20):
    """Pick (block_batch, tn).  M tile targets ~target_rows rows (512-1024 is
    the HBM-roofline plateau); tiles are shrunk to fit a VMEM budget that is
    safe on every generation (v7x has only 64 MiB physical per TC)."""
    bb = _align_block_batch(max(1, target_rows // max(1, patches)), batch, patches)
    # Keep at least 2 grid steps on the batch axis when possible so both
    # TensorCores on a v7x chip get work (free on v5e/v6e).
    if bb == batch and batch > 1:
        cand = _align_block_batch(pl.cdiv(batch, 2), batch, patches)
        if cand < batch:
            bb = cand

    tn = min(vfs_pad, max_tn)
    pb_per_patch = (patches % 8 == 0)

    def tile_bytes(bb_, tn_):
        mt = bb_ * patches
        pb_rows = patches if pb_per_patch else mt
        # Pessimistic: every operand double-buffered (Pallas default).
        return 4 * (2 * mt * dim_inter + 2 * dim_inter * tn_
                    + 2 * pb_rows * tn_ + 2 * mt * tn_)

    while tile_bytes(bb, tn) > tile_budget_bytes:
        if tn > 512:
            tn = max(512, tn // 2)
            continue
        smaller = _align_block_batch(max(1, bb // 2), batch, patches)
        if smaller < bb:
            bb = smaller
        else:
            break
    return bb, tn


def dexter2seq_forward(X, weight, bias, pos_emb, *, patches, dim_inter, vfs,
                       block_batch=None, block_vfs=None, compute_dtype=None):
    """X: (batch, patches*dimInter).  weight: (vfs, dimInter) (nn.Linear layout),
    bias: (vfs,), pos_emb: (patches, vfs) (nn.Embedding table; position indices
    are arange(patches) broadcast over batch, so the gather is the full table).
    Returns (batch, patches, vfs)."""
    batch = X.shape[0]
    M = batch * patches
    out_dtype = X.dtype

    # Lane-dense output width.
    vfs_pad = ((vfs + 127) // 128) * 128
    pb_per_patch = (patches % 8 == 0)

    bb_def, tn_def = _select_tiles(batch, patches, dim_inter, vfs_pad)
    bb = bb_def if block_batch is None else min(block_batch, batch)
    tn = tn_def if block_vfs is None else min(block_vfs, vfs_pad)
    Mt = bb * patches

    # Same data as torch's X.view(batch, patches, dimInter), flattened row-major.
    x2 = X.reshape(M, dim_inter)

    # One-time XLA transpose (hoisted out of the hot loop): canonical (K, N) RHS.
    w_t = weight.T                                            # (dimInter, vfs)
    # Fuse bias into the position table once (outside the hot loop).
    pos_plus_bias = pos_emb + bias[None, :]                   # (patches, vfs)
    if vfs_pad != vfs:
        pad = vfs_pad - vfs
        w_t = jnp.pad(w_t, ((0, 0), (0, pad)))                # (dimInter, vfs_pad)
        pos_plus_bias = jnp.pad(pos_plus_bias, ((0, 0), (0, pad)))

    if compute_dtype is not None:
        # Optional: bf16 inputs halve the dominant DMA traffic; accumulation
        # stays f32 via preferred_element_type.  Off by default (numerics).
        x2 = x2.astype(compute_dtype)
        w_t = w_t.astype(compute_dtype)

    if pb_per_patch:
        pb = pos_plus_bias                                    # (patches, vfs_pad)
        pb_block = (patches, tn)
        pb_rows = patches
    else:
        # Fallback: replicate only to ONE block's worth of rows (not all of M).
        pb = jnp.broadcast_to(pos_plus_bias[None],
                              (bb, patches, vfs_pad)).reshape(Mt, vfs_pad)
        pb_block = (Mt, tn)
        pb_rows = Mt

    grid = (pl.cdiv(batch, bb), pl.cdiv(vfs_pad, tn))

    # VMEM limit from the actual tile footprint (+25% headroom), never the full
    # 64 MiB of a v7x core; clamped to a range safe on all generations.
    est = 4 * (2 * Mt * dim_inter + 2 * dim_inter * tn
               + 2 * pb_rows * tn + 2 * Mt * tn)
    vmem_limit = int(min(max((est * 5) // 4 + (2 << 20), 32 << 20), 96 << 20))

    kernel = _make_kernel(bb, patches, pb_per_patch)

    out = pl.pallas_call(
        kernel,
        out_shape=jax.ShapeDtypeStruct((M, vfs_pad), out_dtype),
        grid_spec=pltpu.PrefetchScalarGridSpec(
            num_scalar_prefetch=0,
            grid=grid,
            in_specs=[
                pl.BlockSpec((Mt, dim_inter), lambda b, n: (b, 0)),  # X rows
                pl.BlockSpec((dim_inter, tn), lambda b, n: (0, n)),  # W^T (resident over b)
                pl.BlockSpec(pb_block, lambda b, n: (0, n)),         # pos+bias (resident over b)
            ],
            out_specs=pl.BlockSpec((Mt, tn), lambda b, n: (b, n)),
        ),
        compiler_params=pltpu.CompilerParams(
            dimension_semantics=("parallel", "parallel"),   # megacore / v7x 2-TC sharding
            vmem_limit_bytes=vmem_limit),
    )(x2, w_t, pb)

    if vfs_pad != vfs:
        out = out[:, :vfs]
    return out.reshape(batch, patches, vfs)


def _reference(X, weight, bias, pos_emb, *, patches, dim_inter):
    batch = X.shape[0]
    y = X.reshape(batch, patches, dim_inter) @ weight.T + bias
    return y + pos_emb[None, :, :]


if __name__ == "__main__":
    # Small shapes consistent with the module's forward: X is (batch, patches*dimInter).
    batch = 2
    patches = 8
    dim_inter = 32
    vfs = 32  # visual_feature_size

    key = jax.random.PRNGKey(0)
    k_x, k_w, k_b, k_p = jax.random.split(key, 4)

    X = jax.random.normal(k_x, (batch, patches * dim_inter), dtype=jnp.float32)
    # nn.Linear(dimInter, vfs): weight (vfs, dimInter), bias (vfs,)
    weight = jax.random.normal(k_w, (vfs, dim_inter), dtype=jnp.float32) * 0.05
    bias = jax.random.normal(k_b, (vfs,), dtype=jnp.float32) * 0.05
    # nn.Embedding(patches, vfs) table.
    pos_emb = jax.random.normal(k_p, (patches, vfs), dtype=jnp.float32) * 0.05

    out = dexter2seq_forward(
        X, weight, bias, pos_emb,
        patches=patches, dim_inter=dim_inter, vfs=vfs)
    out = jax.block_until_ready(out)

    ref = _reference(X, weight, bias, pos_emb, patches=patches, dim_inter=dim_inter)
    assert out.shape == (batch, patches, vfs)
    assert jnp.allclose(out, ref, atol=1e-5, rtol=1e-5)

    # Ragged last grid step: batch not divisible by block_batch.
    batch2 = 3
    X2 = jax.random.normal(key, (batch2, patches * dim_inter), dtype=jnp.float32)
    out2 = dexter2seq_forward(
        X2, weight, bias, pos_emb,
        patches=patches, dim_inter=dim_inter, vfs=vfs, block_batch=2)
    out2 = jax.block_until_ready(out2)
    ref2 = _reference(X2, weight, bias, pos_emb, patches=patches, dim_inter=dim_inter)
    assert out2.shape == (batch2, patches, vfs)
    assert jnp.allclose(out2, ref2, atol=1e-5, rtol=1e-5)

    print("KERNEL_OK")
</pallas_src>

<mosaic_0001>
module attributes {stable_mosaic.version = 11 : i64} {
  func.func @kernel(%arg0: i32, %arg1: i32, %arg2: memref<8x32xf32, #tpu.memory_space<vmem>>, %arg3: memref<32x128xf32, #tpu.memory_space<vmem>>, %arg4: memref<8x128xf32, #tpu.memory_space<vmem>>, %arg5: memref<8x128xf32, #tpu.memory_space<vmem>>) attributes {dimension_semantics = [#tpu.dimension_semantics<parallel>, #tpu.dimension_semantics<parallel>], iteration_bounds = array<i64: 2, 1>, scalar_prefetch = 0 : i64, scratch_operands = 0 : i64, tpu.core_type = #tpu.core_type<tc>, window_params = [{transform_indices = @transform_0, window_bounds = array<i64: 8, 32>}, {transform_indices = @transform_1, window_bounds = array<i64: 32, 128>}, {transform_indices = @transform_2, window_bounds = array<i64: 8, 128>}, {transform_indices = @transform_3, window_bounds = array<i64: 8, 128>}]} {
    %c0 = arith.constant 0 : index
    %c0_0 = arith.constant 0 : index
    %0 = vector.load %arg2[%c0, %c0_0] : memref<8x32xf32, #tpu.memory_space<vmem>>, vector<8x32xf32>
    %c0_1 = arith.constant 0 : index
    %c0_2 = arith.constant 0 : index
    %1 = vector.load %arg3[%c0_1, %c0_2] : memref<32x128xf32, #tpu.memory_space<vmem>>, vector<32x128xf32>
    %cst = arith.constant dense<0.000000e+00> : vector<8x128xf32>
    %2 = tpu.matmul %0, %1, %cst {dimension_numbers = #tpu.dot_dimension_numbers<[1], [0], [0], [1], [0, 0, 1, 1], [], []>} : vector<8x32xf32>, vector<32x128xf32>, vector<8x128xf32> -> vector<8x128xf32>
    %3 = vector.shape_cast %2 : vector<8x128xf32> to vector<1x8x128xf32>
    %c0_3 = arith.constant 0 : index
    %c0_4 = arith.constant 0 : index
    %4 = vector.load %arg4[%c0_3, %c0_4] : memref<8x128xf32, #tpu.memory_space<vmem>>, vector<8x128xf32>
    %5 = vector.shape_cast %4 : vector<8x128xf32> to vector<1x8x128xf32>
    %6 = arith.addf %3, %5 : vector<1x8x128xf32>
    %7 = vector.shape_cast %6 : vector<1x8x128xf32> to vector<8x128xf32>
    %c0_5 = arith.constant 0 : index
    %c0_6 = arith.constant 0 : index
    %8 = vector.load %arg5[%c0_5, %c0_6] : memref<8x128xf32, #tpu.memory_space<vmem>>, vector<8x128xf32>
    tpu.vector_store %arg5[%c0_5, %c0_6], %7 {strides = array<i32>} : memref<8x128xf32, #tpu.memory_space<vmem>>, vector<8x128xf32>,
    return
  }
  func.func @transform_0(%arg0: i32, %arg1: i32) -> (i32, i32) {
    %c0_i32 = arith.constant 0 : i32
    %c0_i32_0 = arith.constant 0 : i32
    return %arg0, %c0_i32 : i32, i32
  }
  func.func @transform_1(%arg0: i32, %arg1: i32) -> (i32, i32) {
    %c0_i32 = arith.constant 0 : i32
    %c0_i32_0 = arith.constant 0 : i32
    return %c0_i32, %arg1 : i32, i32
  }
  func.func @transform_2(%arg0: i32, %arg1: i32) -> (i32, i32) {
    %c0_i32 = arith.constant 0 : i32
    %c0_i32_0 = arith.constant 0 : i32
    return %c0_i32, %arg1 : i32, i32
  }
  func.func @transform_3(%arg0: i32, %arg1: i32) -> (i32, i32) {
    %c0_i32 = arith.constant 0 : i32
    return %arg0, %arg1 : i32, i32
  }
}

</mosaic_0001>

<bundles_post_ra>
// kernel: tpu_custom_call.1
= control target key start
LH: loop header
LB: loop body
LE: loop exit
PB: predicated region body
PF: predicated region fallthrough
CT: control target
= control target key end

     0   :  { %8 = vsyncpa [#allocation3], 0  ;;  %s1021_s0 = inlined_call_operand.hbm [shape: f32[16,32], index: 0, kind: input, shape index: {}]   ;;  %s1022_s1 = inlined_call_operand.hbm [shape: f32[32,128], index: 1, kind: input, shape index: {}]   ;;  %s1023_s2 = inlined_call_operand.hbm [shape: f32[8,128], index: 2, kind: input, shape index: {}]   ;;  %s1024_s3 = inlined_call_operand.hbm [shape: f32[16,128], index: 3, kind: output, shape index: {}]  }
   0x1   :  { %10 = vsyncpa [#allocation3 + $0x1], 0 }
   0x2   :  { %11 = vsyncpa [#allocation6], 0 }
   0x3   :  { %12 = vsyncpa [#allocation4], 0 }
   0x4   :  { %14 = vsyncpa [#allocation4 + $0x1], 0  ;;  %s771_s12 = smov 0   ;;  %s773_s13 = smov 0  }
   0x5   :  { %s775_s14 = smov 0   ;;  %s777_s15 = smov 0  }
   0x6   :  { %s779_s16 = smov 0   ;;  %s781_s17 = smov 0  }
   0x7 LB: > { %s440_s18 = sadd.s32 4294967295, %s740_s17   ;;  %s441_s19 = sadd.s32 4294967294, %s740_s17   ;;  %s740_s17 = sphi %s781_s17, %s20_s17   ;;  %s736_s16 = sphi %s779_s16, %s1046_s16   ;;  %s732_s15 = sphi %s777_s15, %s1045_s15   ;;  %s728_s14 = sphi %s775_s14, %s1044_s14   ;;  %s724_s13 = sphi %s773_s13, %s1043_s13   ;;  %s720_s12 = sphi %s771_s12, %s1042_s12  }
   0x8   : > { %p52_p0 = scmp.ne.s32.totalorder %s724_s13, %s720_s12  ;;  %p805_p1 = scmp.eq.s32.totalorder %s440_s18, 0 }
   0x9   : > { %p809_p2 = scmp.eq.s32.totalorder %s440_s18, 1  ;;  %p136_p3 = scmp.eq.s32.totalorder %s441_s19, 1 }
   0xa   : > { %s1029_s20 = scalar_select %p805_p1, 1, 0 }
   0xb   : > { %p815_p4 = por %p805_p1, %p52_p0  ;;  %p442_p5 = scmp.ge.s32.totalorder %s740_s17, 1 }
   0xc   : > { %p820_p6 = por %p136_p3, %p52_p0  ;;  %p143_p7 = scmp.lt.s32.totalorder %s740_s17, 3 }
   0xd   : > { %s1031_s22 = scalar_select %p815_p4, 1, 0 }
   0xe   : > { %s1032_s23 = scalar_select %p820_p6, 1, 0 }
   0xf   : > { %p825_p8 = pnand %p442_p5, %p143_p7  ;;  %s742_s25 = smov [#allocation5]  }
  0x10   : > { %s157_s26 = sshll.u32 %s742_s25, 4  ;;  %s743_s28 = smov [#allocation7]   ;;  %s829_s26 = int_to_ptr.vmem [resolvable:$true] %s157_s26 }
  0x11   : > { %p492_p9 = pneg %p825_p8  ;;  %s173_s29 = sshll.u32 %s743_s28, 4  ;;  %s840_s29 = int_to_ptr.vmem [resolvable:$true] %s173_s29 }
  0x12   : > { %s568_s5 = scalar_lea.hbm %s1022_s1, 512 }
  0x13   : > { %p836_p11 = pnand %p492_p9, %p805_p1  ;;  %p569_p12 = scmp.ne.s32.totalorder %s1022_s1, %s568_s5 }
  0x14   : > { %p575_p5 = scmp.lt.u32.totalorder %s568_s5, %s1022_s1 }
  0x15   : > { %p570_p13 = pneg %p836_p11 }
  0x17   : > { %p571_p0 = pnand %p570_p13, %p569_p12 }
  0x19   : > { %p572_p3 = pneg %p571_p0 }
  0x1b   : > { %p577_p7 = pnand %p575_p5, %p572_p3 }
  0x1d   : > { %580 = shalt.err (!%p577_p7)
}
  0x1e   : > { %s581_s10 = scalar_lea.vmem %s829_s26, 512  ;;  %p589_p1 = scmp.lt.s32.totalorder %s829_s26, %s829_s26 }
  0x1f   : > { %p582_p9 = scmp.ne.s32.totalorder %s829_s26, %s581_s10  ;;  %p590_p12 = scmp.lt.s32.totalorder %s581_s10, %s581_s10 }
  0x21   : > { %p584_p10 = pnand %p582_p9, %p570_p13  ;;  %p591_p0 = por %p590_p12, %p589_p1 }
  0x23   : > { %p585_p6 = pneg %p584_p10 }
  0x25   : > { %p592_p4 = pnand %p591_p0, %p585_p6 }
  0x27   : > { %595 = shalt.err (!%p592_p4)
}
  0x28   : > { %s744_s11 = smov 128   ;;  %s745_s18 = smov 8  }
  0x29   : > { %495 = dma.hbm_to_vmem [thread:$0]  (!%p836_p11), %s1022_s1, 512, %s829_s26, [#allocation6], %s744_s11, %s744_s11, %s745_s18  }
  0x2a   : > { %s596_s4 = scalar_lea.hbm %s1023_s2, 128 }
  0x2b   : > { %p597_p1 = scmp.ne.s32.totalorder %s1023_s2, %s596_s4  ;;  %p603_p10 = scmp.lt.u32.totalorder %s596_s4, %s1023_s2 }
  0x2d   : > { %p599_p4 = pnand %p597_p1, %p570_p13 }
  0x2f   : > { %p600_p6 = pneg %p599_p4 }
  0x31   : > { %p605_p3 = pnand %p603_p10, %p600_p6 }
  0x33   : > { %608 = shalt.err (!%p605_p3)
}
  0x34   : > { %s609_s26 = scalar_lea.vmem %s840_s29, 128  ;;  %p617_p12 = scmp.lt.s32.totalorder %s840_s29, %s840_s29 }
  0x35   : > { %p610_p5 = scmp.ne.s32.totalorder %s840_s29, %s609_s26  ;;  %p618_p0 = scmp.lt.s32.totalorder %s609_s26, %s609_s26 }
  0x37   : > { %p612_p7 = pnand %p610_p5, %p570_p13  ;;  %p619_p1 = por %p618_p0, %p617_p12 }
  0x39   : > { %p613_p9 = pneg %p612_p7 }
  0x3b   : > { %p620_p4 = pnand %p619_p1, %p613_p9 }
  0x3d   : > { %623 = shalt.err (!%p620_p4)
}
  0x3e   : > { %498 = dma.hbm_to_vmem [thread:$0]  (!%p836_p11), %s1023_s2, 128, %s840_s29, [#allocation6]  }
  0x3f   : > { %s32_s11 = sadd.s32 1, %s736_s16  ;;  %s39_s18 = sadd.s32 1, %s728_s14 }
  0x40   : > { %p34_p13 = scmp.ge.s32.totalorder %s32_s11, 2  ;;  %p46_p6 = scmp.ne.s32.totalorder %s728_s14, %s724_s13 }
  0x41   : > { %p47_p10 = scmp.eq.s32.totalorder %s740_s17, 0  ;;  %p509_p3 = scmp.lt.s32.totalorder %s740_s17, 2 }
  0x42   : > { %s1048_s11 = smov (%p34_p13, %s32_s11), 0  ;;  %p904_p7 = por %p809_p2, %p46_p6 }
  0x43   : > { %p48_p5 = por %p47_p10, %p46_p6  ;;  %s36_s19 = ssub.s32 %s736_s16, %s1048_s11 }
  0x44   : > { %s1035_s27 = scalar_select %p904_p7, 1, 0 }
  0x45   : > { %s184_s25 = sand.u32 1, %s728_s14   ;;  %p37_p9 = scmp.eq.s32.totalorder %s36_s19, 0 }
  0x46   : > { %s446_s29 = sshll.u32 %s184_s25, 3  ;;  %s447_s28 = sshll.u32 %s736_s16, 7 }
  0x47   : > { %s913_s30 = scalar_select %p37_p9, %s728_s14, %s39_s18  }
  0x48   : > { %s918_s6 = scalar_lea.hbm %s1021_s0, %s447_s28  ;;  %s188_s21 = scalar_lea.vmem [#allocation2], %s446_s29 }
  0x49   : > { %s195_s7 = sshll.u32 %s188_s21, 4  ;;  %p922_p2 = pnand %p509_p3, %p48_p5  ;;  %s926_s7 = int_to_ptr.vmem [resolvable:$true] %s195_s7 }
  0x4a   : > { %s185_s26 = scalar_lea.sflag [#allocation3], %s184_s25  ;;  %s624_s9 = scalar_lea.hbm %s918_s6, 128 }
  0x4b   : > { %p625_p11 = scmp.ne.s32.totalorder %s918_s6, %s624_s9  ;;  %p626_p12 = pneg %p922_p2 }
  0x4c   : > { %s629_s19 = scalar_lea.hbm %s1021_s0, 256  ;;  %p630_p4 = scmp.lt.u32.totalorder %s918_s6, %s1021_s0 }
  0x4d   : > { %p627_p0 = pnand %p626_p12, %p625_p11  ;;  %p631_p13 = scmp.lt.u32.totalorder %s629_s19, %s624_s9 }
  0x4e   : > { %p633_p10 = scmp.lt.u32.totalorder %s624_s9, %s918_s6 }
  0x4f   : > { %p628_p1 = pneg %p627_p0  ;;  %p632_p6 = por %p631_p13, %p630_p4 }
  0x51   : > { %p634_p3 = por %p633_p10, %p632_p6 }
  0x53   : > { %p635_p5 = pnand %p634_p3, %p628_p1 }
  0x55   : > { %638 = shalt.err (!%p635_p5)
}
  0x56   : > { %s639_s25 = scalar_lea.vmem %s926_s7, 128  ;;  %s746_s4 = smov [#allocation2]  }
  0x57   : > { %p640_p9 = scmp.ne.s32.totalorder %s926_s7, %s639_s25  ;;  %s644_s5 = sshll.u32 %s746_s4, 4  ;;  %s645_s5 = int_to_ptr.vmem [resolvable:$false] %s644_s5 }
  0x58   : > { %s646_s21 = scalar_lea.vmem %s645_s5, 256  ;;  %p647_p7 = scmp.lt.s32.totalorder %s926_s7, %s645_s5 }
  0x59   : > { %p642_p11 = pnand %p640_p9, %p626_p12  ;;  %p648_p4 = scmp.lt.s32.totalorder %s646_s21, %s639_s25 }
  0x5b   : > { %p643_p0 = pneg %p642_p11  ;;  %p649_p13 = por %p648_p4, %p647_p7 }
  0x5d   : > { %p650_p6 = pnand %p649_p13, %p643_p0 }
  0x5f   : > { %653 = shalt.err (!%p650_p6)
}
  0x60   : > { %502 = dma.hbm_to_vmem [thread:$0]  (!%p922_p2), %s918_s6, 128, %s926_s7, %s185_s26  }
  0x61   : > { %204 = sbr.rel (%p825_p8) target bundleno = 347 (0x15b), region = 32  ;;  %s956_s9 = sand.u32 (!%p825_p8), 1, %s724_s13  }
  0x62   : > { %s449_s10 = sshll.u32 (!%p825_p8), %s956_s9, 3  ;;  %s207_s18 = scalar_lea.sflag (!%p825_p8), [#allocation3], %s956_s9 }
  0x63   : > { %s210_s19 = scalar_lea.vmem (!%p825_p8), [#allocation2], %s449_s10  ;;  %p1037_p7 = scmp.ne.s32.totalorder (!%p825_p8), %s1031_s22, 0 }
  0x68   : > { %707 = dma.done.wait (%p1037_p7), %s207_s18, 128  }
  0x69   : > { %709 = vsyncadd (%p1037_p7), %s207_s18, 4294967168  ;;  %p1038_p12 = scmp.ne.s32.totalorder %s1029_s20, 0 }
  0x6b   : > { %711 = dma.done.wait (%p1038_p12), [#allocation6], 640  }
  0x6c   : > { %713 = vsyncadd (%p1038_p12), [#allocation6], 4294966656  ;;  %v747_v0 = vmov 0.0|0.0   ;;  %vm748_vm0 = vmmov 0   ;;  %v749_v1 = vmov 0.0   ;;  %v242_v2 = vld [vmem:[#allocation5] sm:$0xff] }
  0x6d   : > { %474 = vmatprep.subr.bf16.mxu0 %v747_v0  ;;  %471 = vmatprep.mubr.msk.f32.mxu0 %vm748_vm0, %v749_v1  ;;  %v243_v3 = vld [vmem:[#allocation5 + $0x8] sm:$0xff]  ;;  %v244_v4 = vld [vmem:[#allocation5 + $0x10] sm:$0xff]  ;;  %v245_v6 = vld [vmem:[#allocation5 + $0x18] sm:$0xff]  ;;  %vm246_vm1 = vcmask 261120   ;;  %s455_s20 = sshll.u32 %s732_s15, 7  ;;  %s240_s22 = scalar_lea.vmem [#allocation8], %s449_s10 }
  0x6e   : > { %v475_v5 = vpack.c.bf16 %v243_v3, %v242_v2  ;;  %v478_v7 = vpack.c.bf16 %v245_v6, %v244_v4  ;;  %v241_v8 = vld [vmem:[%s210_s19] sm:$0xff]  ;;  %v320_v9 = vld [vmem:[#allocation7] sm:$0xff]  ;;  %s338_s24 = sshll.u32 %s240_s22, 4  ;;  %s972_s8 = scalar_lea.hbm %s1024_s3, %s455_s20  ;;  %s974_s24 = int_to_ptr.vmem [resolvable:$true] %s338_s24 }
  0x6f   : > { %s324_s26 = scalar_lea.sflag [#allocation4], %s956_s9  ;;  %s654_s29 = scalar_lea.vmem %s974_s24, 128 }
  0x70   : > { %476 = vmatpush3.bf16.msra.mxu0 %v475_v5  ;;  %p655_p8 = scmp.ne.s32.totalorder %s974_s24, %s654_s29  ;;  %p1039_p2 = scmp.ne.s32.totalorder %s1035_s27, 0 }
  0x71   : > { %477 = vmatprep.subr.bf16.mxu0 %v747_v0  ;;  %s750_s15 = smov [#allocation8]  }
  0x72   : > { %p656_p1 = pnand %p655_p8, %p1039_p2  ;;  %s658_s28 = sshll.u32 %s750_s15, 4  ;;  %s659_s28 = int_to_ptr.vmem [resolvable:$false] %s658_s28 }
  0x73   : > { %s660_s25 = scalar_lea.vmem %s659_s28, 256  ;;  %p661_p3 = scmp.lt.s32.totalorder %s974_s24, %s659_s28 }
  0x74   : > { %479 = vmatpush3.bf16.msra.mxu0 %v478_v7  ;;  %p657_p10 = pneg %p656_p1  ;;  %p662_p5 = scmp.lt.s32.totalorder %s660_s25, %s654_s29 }
  0x76   : > { %p663_p9 = por %p662_p5, %p661_p3 }
  0x77   : > { %472 = vmatmul.mubr.msk.f32.vlgmr.msra.gmra.mrb[0].mxu0 %vm246_vm1, %v241_v8 }
  0x78   : > { %p664_p11 = pnand %p663_p9, %p657_p10 }
 0x14a   : > { %v316_v10 = vpop.f32.mrb[0].mxu0 }
 0x14b   : > { %v321_v11 = vadd.f32 %v320_v9, %v316_v10  ;;  %v473_v12 = vpop.f32.mrb[1].mxu0 }
 0x14d   : > { %322 = vst [vmem:[%s240_s22] sm:$0xff] %v321_v11 }
 0x14e   : > { %667 = shalt.err (!%p664_p11)
}
 0x14f   : > { %s668_s4 = scalar_lea.hbm %s972_s8, 128  ;;  %s672_s9 = scalar_lea.hbm %s1024_s3, 256 }
 0x150   : > { %p669_p0 = scmp.ne.s32.totalorder %s972_s8, %s668_s4  ;;  %p673_p6 = scmp.lt.u32.totalorder %s972_s8, %s1024_s3 }
 0x151   : > { %p674_p7 = scmp.lt.u32.totalorder %s672_s9, %s668_s4  ;;  %p676_p8 = scmp.lt.u32.totalorder %s668_s4, %s972_s8 }
 0x152   : > { %p670_p4 = pnand %p669_p0, %p1039_p2 }
 0x153   : > { %p675_p12 = por %p674_p7, %p673_p6 }
 0x154   : > { %p671_p13 = pneg %p670_p4 }
 0x155   : > { %p677_p1 = por %p676_p8, %p675_p12 }
 0x157   : > { %p678_p10 = pnand %p677_p1, %p671_p13 }
 0x159   : > { %681 = shalt.err (!%p678_p10)
}
 0x15a   : > { %490 = dma.vmem_to_hbm [thread:$0]  (%p1039_p2), %s974_s24, 128, %s972_s8, %s324_s26  }
 0x15b PF: > { %s350_s19 = sand.u32 1, %s720_s12   ;;  %p1040_p3 = scmp.ne.s32.totalorder %s1032_s23, 0 }
 0x15c   : > { %p1041_p5 = scmp.ge.s32.totalorder %s740_s17, 2  ;;  %s351_s20 = scalar_lea.sflag [#allocation4], %s350_s19 }
 0x15e   : > { %p504_p9 = pnand %p1041_p5, %p1040_p3 }
 0x160   : > { %715 = dma.done.wait (!%p504_p9), %s351_s20, 128  }
 0x161   : > { %717 = vsyncadd (!%p504_p9), %s351_s20, 4294967168  ;;  %s20_s17 = sadd.s32 1, %s740_s17   ;;  %s1042_s12 = smov %s724_s13 }
 0x162   : > { %p17_p11 = scmp.ge.s32.totalorder %s20_s17, 4   ;;  %s1043_s13 = smov %s728_s14 }
 0x163   : > { %s1044_s14 = smov %s913_s30  ;;  %s1045_s15 = smov %s736_s16 }
 0x164   : > { %s1046_s16 = smov %s1048_s11  ;;  %19 = sbr.rel (!%p17_p11) target bundleno = 7 (0x7), region = 87 }
 0x16b   :  { %356 = vsyncpa [#allocation3], 1 }
 0x16c   :  { %358 = vsyncpa [#allocation3 + $0x1], 1 }
 0x16d   :  { %359 = vsyncpa [#allocation6], 1 }
 0x16e   :  { %360 = vsyncpa [#allocation4], 1 }
 0x16f   :  { %362 = vsyncpa [#allocation4 + $0x1], 1 }

</bundles_post_ra>
